<compile_context>
chip_gen: v6e
topology: v6e:2x2x1
jax: 0.10.0
libtpu: 0.0.40
codegen_flags: <defaults>
</compile_context>

<pallas_src>
import functools

import jax
import jax.numpy as jnp
from jax import lax
from jax.experimental import pallas as pl
from jax.experimental.pallas import tpu as pltpu

DEGREE = 3          # KALNConv1DLayer default Legendre degree
IN_EPS = 1e-5       # nn.InstanceNorm1d default eps
LOSS_COEF = 1e-2
MM_DTYPE = jnp.bfloat16   # MXU operand dtype (weights + im2col basis)
# TODO(synk): on v7x the per-expert weights could additionally be fp8.


# ----------------------------------------------------------------------------
# In-kernel helpers (traced inside the Pallas kernels)
# ----------------------------------------------------------------------------
def _silu(x):
    # divide goes to the EUP slot (approx reciprocal), mul/add stay on the VPU
    return x * pl.reciprocal(1.0 + jnp.exp(-x), approx=True)


def _legendre_polys(xn, degree):
    """List of Legendre polynomials P0..P_degree evaluated at xn."""
    p0 = jnp.ones_like(xn)
    if degree == 0:
        return [p0]
    polys = [p0, xn]
    for n in range(1, degree):
        pn = ((2.0 * n + 1.0) * xn * polys[-1] - n * polys[-2]) * (1.0 / (n + 1.0))
        polys.append(pn)
    return polys


def _features(x, a, b, degree):
    """x:(Cin,N) f32 -> ((degree+2)*Cin, N): rows [SiLU(x), P0..Pd(a*x+b)]."""
    act = _silu(x)
    xn = a * x + b
    return jnp.concatenate([act] + _legendre_polys(xn, degree), axis=0)


def _im2col(feats, kernel_size, padding, length):
    """feats:(C,N) with samples laid out as contiguous `length`-lane blocks.

    Returns (K*C, N) where row t*C+c holds feats[c, n + t - padding] with zeros
    outside the sample (zero "same" conv padding, stride=1)."""
    if kernel_size == 1 and padding == 0:
        return feats
    n_lanes = feats.shape[1]
    # hoisted: one iota + K-1 cheap compares per kernel invocation
    pos = lax.broadcasted_iota(jnp.int32, (1, n_lanes), 1) % length
    pieces = []
    for t in range(kernel_size):
        d = t - padding
        if d == 0:
            pieces.append(feats)
        else:
            rolled = pltpu.roll(feats, shift=(-d) % n_lanes, axis=1)
            valid = jnp.logical_and(pos + d >= 0, pos + d < length)
            pieces.append(jnp.where(valid, rolled, 0.0))
    return jnp.concatenate(pieces, axis=0)


def _instance_norm_silu(acc, sel, sel_t, length):
    """acc:(Cout,N) f32, samples = contiguous `length`-lane segments.

    InstanceNorm1d (biased var, no affine) per (sample, channel) via selector
    matmuls (segmented lane reduction on the MXU), followed by SiLU."""
    inv_l = 1.0 / float(length)
    mean = jnp.dot(acc, sel, preferred_element_type=jnp.float32) * inv_l       # (Cout,bb)
    msq = jnp.dot(acc * acc, sel, preferred_element_type=jnp.float32) * inv_l  # (Cout,bb)
    var = msq - mean * mean
    inv_std = lax.rsqrt(var + IN_EPS)
    mean_f = jnp.dot(mean, sel_t, preferred_element_type=jnp.float32)          # (Cout,N)
    istd_f = jnp.dot(inv_std, sel_t, preferred_element_type=jnp.float32)       # (Cout,N)
    z = (acc - mean_f) * istd_f
    return _silu(z)


# ----------------------------------------------------------------------------
# Pallas kernels
# ----------------------------------------------------------------------------
def _kaln_kernel(norm_ref, x_ref, w_ref, sel_ref, selt_ref, o_ref, *,
                 kernel_size, padding, degree, length):
    # norm_ref:(2,) SMEM   x_ref:(Cin,Nt)   w_ref:(Cout,K*(D+2)*Cin) bf16
    feats = _features(x_ref[...], norm_ref[0], norm_ref[1], degree)
    fim = _im2col(feats, kernel_size, padding, length).astype(w_ref.dtype)
    acc = jnp.dot(w_ref[...], fim, preferred_element_type=jnp.float32)
    o_ref[...] = _instance_norm_silu(acc, sel_ref[...], selt_ref[...], length)


def _kaln_res_kernel(norm_ref, x_ref, w_ref, sel_ref, selt_ref, res_ref, o_ref,
                     *, kernel_size, padding, degree, length):
    # same as _kaln_kernel + fused residual add (saves one HBM round trip)
    feats = _features(x_ref[...], norm_ref[0], norm_ref[1], degree)
    fim = _im2col(feats, kernel_size, padding, length).astype(w_ref.dtype)
    acc = jnp.dot(w_ref[...], fim, preferred_element_type=jnp.float32)
    y = _instance_norm_silu(acc, sel_ref[...], selt_ref[...], length)
    o_ref[...] = y + res_ref[...]


def _moe_kaln_kernel(active_ref, norm_ref, gates_ref, x_ref, w_ref, sel_ref,
                     selt_ref, o_ref, fim_ref, *, kernel_size, padding, degree,
                     length):
    # grid = (batch_tiles, experts); expert axis innermost -> o_ref resident.
    # active_ref:(E,) i32 SMEM   norm_ref:(2,) f32 SMEM
    # gates_ref:(1,1,Nt)   x_ref:(Cin,Nt)   w_ref:(1,Cout,K*(D+2)*Cin) bf16
    # fim_ref: VMEM scratch (K*(D+2)*Cin, Nt) bf16  (expert-independent basis)
    e = pl.program_id(1)

    @pl.when(e == 0)
    def _():
        o_ref[...] = jnp.zeros_like(o_ref)
        feats = _features(x_ref[...], norm_ref[0], norm_ref[1], degree)
        fim_ref[...] = _im2col(feats, kernel_size, padding,
                               length).astype(fim_ref.dtype)

    @pl.when(active_ref[e] > 0)       # skip experts no sample was routed to
    def _():
        acc = jnp.dot(w_ref[0], fim_ref[...], preferred_element_type=jnp.float32)
        y = _instance_norm_silu(acc, sel_ref[...], selt_ref[...], length)
        o_ref[...] = o_ref[...] + gates_ref[0] * y


# ----------------------------------------------------------------------------
# Wrapper-side layout / parameter plumbing
# ----------------------------------------------------------------------------
def _flatten_ncl(x):
    b, c, l = x.shape
    return jnp.transpose(x, (1, 0, 2)).reshape(c, b * l)


def _unflatten_ncl(x2d, bsz, length):
    c = x2d.shape[0]
    return jnp.transpose(x2d.reshape(c, bsz, length), (1, 0, 2))


def _norm_scalars(x):
    """xn = a*x + b  ==  2*(x-min)/(max-min) - 1, with a zero-range guard."""
    xmin = jnp.min(x)
    xmax = jnp.max(x)
    denom = jnp.maximum(xmax - xmin, jnp.float32(1e-12))  # guard constant input
    a = 2.0 / denom
    b = -2.0 * xmin / denom - 1.0
    return jnp.stack([a, b]).astype(jnp.float32)


def _segment_selectors(bb, length):
    sel = jnp.repeat(jnp.eye(bb, dtype=jnp.float32), length, axis=0)  # (bb*L,bb)
    return sel, jnp.transpose(sel)                                    # , (bb,bb*L)


def _pick_batch_block(bsz, length, cin, kernel_size, degree):
    """Samples per grid step. Keeps lane blocks (8,128)-legal and VMEM-sized."""
    if length % 128 != 0:
        return bsz                      # must use full-array lane blocks
    per_sample = length * cin * (degree + 2) * (kernel_size + 3) * 4
    target = 4 << 20                    # ~4 MiB of per-tile feature data
    bb = 1
    for cand in range(1, bsz + 1):
        if bsz % cand == 0 and cand * per_sample <= target:
            bb = cand
    return bb


def _fuse_kaln_weights(w_base, w_poly):
    """w_base:(Cout,Cin,K), w_poly:(Cout,(D+1)*Cin,K) -> (Cout, K*(D+2)*Cin) bf16.

    Input-channel order matches the kernels' im2col rows:
    tap-major, then [SiLU(x) block, P0 block, ..., Pd block]."""
    cout = w_base.shape[0]
    w = jnp.concatenate([w_base, w_poly], axis=1)          # (Cout,(D+2)*Cin,K)
    return jnp.transpose(w, (0, 2, 1)).reshape(cout, -1).astype(MM_DTYPE)


# ----------------------------------------------------------------------------
# pallas_call wrappers
# ----------------------------------------------------------------------------
def kaln_conv1d(x, w_im, *, kernel_size, padding, degree=DEGREE, residual=None):
    """x:(B,Cin,L), w_im:(Cout, K*(D+2)*Cin) fused bf16 weights -> (B,Cout,L).

    Optional `residual`:(B,Cout,L) is added in the kernel epilogue."""
    bsz, cin, length = x.shape
    cout = w_im.shape[0]
    assert 2 * padding == kernel_size - 1, "stride=1 'same' conv only"
    assert w_im.shape[1] == kernel_size * (degree + 2) * cin

    bb = _pick_batch_block(bsz, length, cin, kernel_size, degree)
    n_tiles = bsz // bb
    n_tile = bb * length

    x2d = _flatten_ncl(x).astype(jnp.float32)
    norm = _norm_scalars(x)
    sel, sel_t = _segment_selectors(bb, length)

    use_res = residual is not None
    kernel = functools.partial(
        _kaln_res_kernel if use_res else _kaln_kernel,
        kernel_size=kernel_size, padding=padding, degree=degree, length=length)

    in_specs = [
        pl.BlockSpec(memory_space=pltpu.MemorySpace.SMEM),         # norm (2,)
        pl.BlockSpec((cin, n_tile), lambda i: (0, i)),             # x slab
        pl.BlockSpec(w_im.shape, lambda i: (0, 0)),                # fused weights
        pl.BlockSpec(sel.shape, lambda i: (0, 0)),                 # selector
        pl.BlockSpec(sel_t.shape, lambda i: (0, 0)),               # selector^T
    ]
    args = [norm, x2d, w_im, sel, sel_t]
    if use_res:
        in_specs.append(pl.BlockSpec((cout, n_tile), lambda i: (0, i)))
        args.append(_flatten_ncl(residual).astype(jnp.float32))

    out2d = pl.pallas_call(
        kernel,
        grid=(n_tiles,),
        in_specs=in_specs,
        out_specs=pl.BlockSpec((cout, n_tile), lambda i: (0, i)),
        out_shape=jax.ShapeDtypeStruct((cout, bsz * length), jnp.float32),
        compiler_params=pltpu.CompilerParams(
            dimension_semantics=("parallel",)),
    )(*args)
    return _unflatten_ncl(out2d, bsz, length)


def moe_kaln_conv1d(x, gates, w_im_e, *, kernel_size, padding, degree=DEGREE):
    """x:(B,Cin,L), gates:(B,E), w_im_e:(E,Cout,K*(D+2)*Cin) bf16 -> (B,Cout,L).

    Dense gate-weighted sum of expert KALN conv outputs; experts with no
    routed sample are skipped in-kernel."""
    bsz, cin, length = x.shape
    num_e, cout, kc5 = w_im_e.shape
    assert kc5 == kernel_size * (degree + 2) * cin
    assert 2 * padding == kernel_size - 1, "stride=1 'same' conv only"

    bb = _pick_batch_block(bsz, length, cin, kernel_size, degree)
    n_tiles = bsz // bb
    n_tile = bb * length

    x2d = _flatten_ncl(x).astype(jnp.float32)
    norm = _norm_scalars(x)
    sel, sel_t = _segment_selectors(bb, length)
    # per-position gate, flattened like the data slabs: (E, 1, B*L)
    gates3 = jnp.repeat(gates.T.astype(jnp.float32), length, axis=1)[:, None, :]
    active = (jnp.sum(gates > 0.0, axis=0) > 0).astype(jnp.int32)    # (E,)

    kernel = functools.partial(_moe_kaln_kernel, kernel_size=kernel_size,
                               padding=padding, degree=degree, length=length)

    out2d = pl.pallas_call(
        kernel,
        grid=(n_tiles, num_e),               # expert axis innermost: accumulate
        in_specs=[
            pl.BlockSpec(memory_space=pltpu.MemorySpace.SMEM),        # active
            pl.BlockSpec(memory_space=pltpu.MemorySpace.SMEM),        # norm
            pl.BlockSpec((1, 1, n_tile), lambda i, e: (e, 0, i)),     # gates
            pl.BlockSpec((cin, n_tile), lambda i, e: (0, i)),         # x slab
            pl.BlockSpec((1, cout, kc5), lambda i, e: (e, 0, 0)),     # expert W
            pl.BlockSpec(sel.shape, lambda i, e: (0, 0)),             # selector
            pl.BlockSpec(sel_t.shape, lambda i, e: (0, 0)),           # selector^T
        ],
        out_specs=pl.BlockSpec((cout, n_tile), lambda i, e: (0, i)),
        out_shape=jax.ShapeDtypeStruct((cout, bsz * length), jnp.float32),
        scratch_shapes=[pltpu.VMEM((kc5, n_tile), MM_DTYPE)],         # im2col
        compiler_params=pltpu.CompilerParams(
            dimension_semantics=("parallel", "arbitrary")),
    )(active, norm, gates3, x2d, w_im_e, sel, sel_t)
    return _unflatten_ncl(out2d, bsz, length)


# ----------------------------------------------------------------------------
# MoE gating / aux loss (tiny, plain-JAX glue)
# ----------------------------------------------------------------------------
def _cv_squared(v):
    eps = 1e-10
    v = v.astype(jnp.float32)
    if v.shape[0] == 1:
        return jnp.float32(0.0)
    return jnp.var(v, ddof=1) / (jnp.mean(v) ** 2 + eps)


def _normal_cdf(x):
    return 0.5 * (1.0 + lax.erf(x * 0.7071067811865476))


def _prob_in_top_k(clean_logits, noisy_logits, noise_std, noisy_top_vals, k):
    """Smooth per-(sample, expert) estimate of P(expert in noisy top-k)."""
    bsz = clean_logits.shape[0]
    m = noisy_top_vals.shape[1]                       # k + 1
    flat = noisy_top_vals.reshape(-1)
    pos_in = jnp.arange(bsz) * m + k
    thr_in = flat[pos_in][:, None]
    thr_out = flat[pos_in - 1][:, None]
    is_in = noisy_logits > thr_in
    prob_in = _normal_cdf((clean_logits - thr_in) / noise_std)
    prob_out = _normal_cdf((clean_logits - thr_out) / noise_std)
    return jnp.where(is_in, prob_in, prob_out)


def noisy_top_k_gating(x, w_gate, w_noise, top_k, train, key,
                       noise_epsilon=1e-2):
    gate_x = jnp.mean(x, axis=-1)                     # (B, Cin)
    clean_logits = gate_x @ w_gate                    # (B, E)
    num_e = w_gate.shape[1]
    if train:
        raw_noise = gate_x @ w_noise
        noise_std = jax.nn.softplus(raw_noise) + noise_epsilon
        noisy_logits = clean_logits + (
            jax.random.normal(key, clean_logits.shape) * noise_std)
        logits = noisy_logits
    else:
        logits = clean_logits

    kk = min(top_k + 1, num_e)
    top_vals, top_idx = lax.top_k(logits, kk)
    top_k_gates = jax.nn.softmax(top_vals[:, :top_k], axis=-1)
    gates = jnp.zeros_like(logits).at[
        jnp.arange(logits.shape[0])[:, None], top_idx[:, :top_k]].set(top_k_gates)

    if train and top_k < num_e:
        load = jnp.sum(_prob_in_top_k(clean_logits, noisy_logits, noise_std,
                                      top_vals, top_k), axis=0)
    else:
        load = jnp.sum((gates > 0).astype(jnp.float32), axis=0)
    return gates, load


# ----------------------------------------------------------------------------
# ResBlockMoE parameters + forward
# ----------------------------------------------------------------------------
def _init_kaln(key, cin, cout, k, degree=DEGREE):
    k1, k2 = jax.random.split(key)
    w_base = jax.random.normal(k1, (cout, cin, k), jnp.float32) * (
        2.0 / (cin * k)) ** 0.5
    w_poly = jax.random.normal(k2, (cout, cin * (degree + 1), k), jnp.float32) * (
        2.0 / (cin * (degree + 1) * k)) ** 0.5
    return {"w_im": _fuse_kaln_weights(w_base, w_poly)}


def _init_moe_kaln(key, cin, cout, k, num_experts, degree=DEGREE):
    keys = jax.random.split(key, num_experts)
    w_im = jnp.stack(
        [_init_kaln(kk, cin, cout, k, degree)["w_im"] for kk in keys], 0)
    return {
        "w_im": w_im,                                             # (E,Cout,K*(D+2)*Cin)
        "w_gate": jnp.zeros((cin, num_experts), jnp.float32),     # zero-init (as ref)
        "w_noise": jnp.zeros((cin, num_experts), jnp.float32),
    }


def init_resblock_moe(key, in_channels, out_channels, bottleneck, num_experts,
                      stride=1):
    assert stride == 1, "only stride=1 is implemented in this synthetic kernel"
    keys = jax.random.split(key, 4)
    params = {"bottleneck": bottleneck,
              "identity_skip": (out_channels == in_channels and stride == 1)}
    if not params["identity_skip"]:
        params["x_transform"] = _init_kaln(keys[3], in_channels, out_channels, 1)
    if bottleneck:
        width = int(out_channels / 4.0)
        params["conv1"] = _init_kaln(keys[0], in_channels, width, 1)
        params["conv2"] = _init_moe_kaln(keys[1], width, width, 3, num_experts)
        params["conv3"] = _init_kaln(keys[2], width, out_channels, 1)
    else:
        params["conv1"] = _init_moe_kaln(keys[0], in_channels, out_channels, 3,
                                         num_experts)
        params["conv2"] = _init_kaln(keys[1], out_channels, out_channels, 1)
    return params


def _moe_layer(params, x, top_k, train, key):
    gates, load = noisy_top_k_gating(x, params["w_gate"], params["w_noise"],
                                     top_k, train, key)
    importance = jnp.sum(gates, axis=0)
    loss = (_cv_squared(importance) + _cv_squared(load)) * LOSS_COEF
    # TODO(synk): reference dispatches per-expert sample subsets, so each
    # expert's Legendre min/max normalization sees only its subset; the dense
    # gate-weighted sum here normalizes with the full-batch min/max instead.
    y = moe_kaln_conv1d(x, gates, params["w_im"], kernel_size=3, padding=1)
    return y, loss


def resblock_moe_forward(params, x, *, top_k, train=True, rng=None):
    if params["identity_skip"]:
        skip = x
    else:
        skip = kaln_conv1d(x, params["x_transform"]["w_im"],
                           kernel_size=1, padding=0)
    if params["bottleneck"]:
        h = kaln_conv1d(x, params["conv1"]["w_im"], kernel_size=1, padding=0)
        h, moe_loss = _moe_layer(params["conv2"], h, top_k, train, rng)
        # TODO(synk): the trailing 1x1 KALN conv could be fused into the MoE
        # kernel epilogue (its min/max normalization needs the full MoE output).
        out = kaln_conv1d(h, params["conv3"]["w_im"], kernel_size=1, padding=0,
                          residual=skip)
    else:
        h, moe_loss = _moe_layer(params["conv1"], x, top_k, train, rng)
        out = kaln_conv1d(h, params["conv2"]["w_im"], kernel_size=1, padding=0,
                          residual=skip)
    return out, moe_loss


# ----------------------------------------------------------------------------
if __name__ == "__main__":
    key = jax.random.PRNGKey(0)
    kx, kp, kn = jax.random.split(key, 3)

    B, C, L = 2, 8, 16           # batch, channels, sequence length
    NUM_EXPERTS, TOP_K = 4, 2

    x = jax.random.normal(kx, (B, C, L), jnp.float32)
    params = init_resblock_moe(kp, in_channels=C, out_channels=C,
                               bottleneck=False, num_experts=NUM_EXPERTS)

    y, moe_loss = resblock_moe_forward(params, x, top_k=TOP_K, train=True,
                                       rng=kn)
    jax.block_until_ready(y)
    jax.block_until_ready(moe_loss)
    assert y.shape == (B, C, L) and bool(jnp.all(jnp.isfinite(y)))
    assert bool(jnp.isfinite(moe_loss))
    print("KERNEL_OK")
</pallas_src>

<mosaic_0001>
module attributes {stable_mosaic.version = 11 : i64} {
  func.func @_moe_kaln_kernel(%arg0: i32, %arg1: i32, %arg2: memref<4xi32, #tpu.memory_space<smem>>, %arg3: memref<2xf32, #tpu.memory_space<smem>>, %arg4: memref<1x1x32xf32, #tpu.memory_space<vmem>>, %arg5: memref<8x32xf32, #tpu.memory_space<vmem>>, %arg6: memref<1x8x120xbf16, #tpu.memory_space<vmem>>, %arg7: memref<32x2xf32, #tpu.memory_space<vmem>>, %arg8: memref<2x32xf32, #tpu.memory_space<vmem>>, %arg9: memref<8x32xf32, #tpu.memory_space<vmem>>, %arg10: memref<120x32xbf16, #tpu.memory_space<vmem>>) attributes {dimension_semantics = [#tpu.dimension_semantics<parallel>, #tpu.dimension_semantics<arbitrary>], iteration_bounds = array<i64: 1, 4>, scalar_prefetch = 0 : i64, scratch_operands = 1 : i64, tpu.core_type = #tpu.core_type<tc>, window_params = [{transform_indices = @transform_0, window_bounds = array<i64: 4>}, {transform_indices = @transform_1, window_bounds = array<i64: 2>}, {transform_indices = @transform_2, window_bounds = array<i64: 1, 1, 32>}, {transform_indices = @transform_3, window_bounds = array<i64: 8, 32>}, {transform_indices = @transform_4, window_bounds = array<i64: 1, 8, 120>}, {pipeline_mode = #tpu.pipeline_mode<synchronous>, transform_indices = @transform_5, window_bounds = array<i64: 32, 2>}, {pipeline_mode = #tpu.pipeline_mode<synchronous>, transform_indices = @transform_6, window_bounds = array<i64: 2, 32>}, {transform_indices = @transform_7, window_bounds = array<i64: 8, 32>}]} {
    %c0_i32 = arith.constant 0 : i32
    %0 = arith.cmpi eq, %arg1, %c0_i32 : i32
    %1 = arith.extui %0 : i1 to i32
    %c0_i32_0 = arith.constant 0 : i32
    %2 = arith.cmpi ne, %1, %c0_i32_0 : i32
    scf.if %2 {
      %cst = arith.constant 0.000000e+00 : f32
      %8 = vector.broadcast %cst : f32 to vector<8x32xf32>
      %c0 = arith.constant 0 : index
      %c0_3 = arith.constant 0 : index
      %9 = vector.load %arg9[%c0, %c0_3] : memref<8x32xf32, #tpu.memory_space<vmem>>, vector<8x32xf32>
      tpu.vector_store %arg9[%c0, %c0_3], %8 {strides = array<i32>} : memref<8x32xf32, #tpu.memory_space<vmem>>, vector<8x32xf32>,
      %c0_4 = arith.constant 0 : index
      %c0_5 = arith.constant 0 : index
      %10 = vector.load %arg5[%c0_4, %c0_5] : memref<8x32xf32, #tpu.memory_space<vmem>>, vector<8x32xf32>
      %c0_6 = arith.constant 0 : index
      %11 = memref.load %arg3[%c0_6] : memref<2xf32, #tpu.memory_space<smem>>
      %c1 = arith.constant 1 : index
      %12 = memref.load %arg3[%c1] : memref<2xf32, #tpu.memory_space<smem>>
      %cst_7 = arith.constant 0.000000e+00 : f32
      %13 = vector.broadcast %cst_7 : f32 to vector<8x32xf32>
      %14 = arith.subf %13, %10 : vector<8x32xf32>
      %15 = math.exp %14 : vector<8x32xf32>
      %cst_8 = arith.constant 1.000000e+00 : f32
      %16 = vector.broadcast %cst_8 : f32 to vector<8x32xf32>
      %17 = arith.addf %16, %15 : vector<8x32xf32>
      %18 = tpu.reciprocal %17 {approx = true} : vector<8x32xf32> -> vector<8x32xf32>
      %19 = arith.mulf %10, %18 : vector<8x32xf32>
      %20 = vector.broadcast %11 : f32 to vector<8x32xf32>
      %21 = arith.mulf %20, %10 : vector<8x32xf32>
      %22 = vector.broadcast %12 : f32 to vector<8x32xf32>
      %23 = arith.addf %21, %22 : vector<8x32xf32>
      %cst_9 = arith.constant 1.000000e+00 : f32
      %24 = vector.broadcast %cst_9 : f32 to vector<8x32xf32>
      %cst_10 = arith.constant 3.000000e+00 : f32
      %25 = vector.broadcast %cst_10 : f32 to vector<8x32xf32>
      %26 = arith.mulf %25, %23 : vector<8x32xf32>
      %27 = arith.mulf %26, %23 : vector<8x32xf32>
      %cst_11 = arith.constant 1.000000e+00 : f32
      %28 = vector.broadcast %cst_11 : f32 to vector<8x32xf32>
      %29 = arith.mulf %28, %24 : vector<8x32xf32>
      %30 = arith.subf %27, %29 : vector<8x32xf32>
      %cst_12 = arith.constant 5.000000e-01 : f32
      %31 = vector.broadcast %cst_12 : f32 to vector<8x32xf32>
      %32 = arith.mulf %30, %31 : vector<8x32xf32>
      %cst_13 = arith.constant 5.000000e+00 : f32
      %33 = vector.broadcast %cst_13 : f32 to vector<8x32xf32>
      %34 = arith.mulf %33, %23 : vector<8x32xf32>
      %35 = arith.mulf %34, %32 : vector<8x32xf32>
      %cst_14 = arith.constant 2.000000e+00 : f32
      %36 = vector.broadcast %cst_14 : f32 to vector<8x32xf32>
      %37 = arith.mulf %36, %23 : vector<8x32xf32>
      %38 = arith.subf %35, %37 : vector<8x32xf32>
      %cst_15 = arith.constant 0.333333343 : f32
      %39 = vector.broadcast %cst_15 : f32 to vector<8x32xf32>
      %40 = arith.mulf %38, %39 : vector<8x32xf32>
      %41 = tpu.concatenate %19, %24, %23, %32, %40 in 0 : vector<8x32xf32>, vector<8x32xf32>, vector<8x32xf32>, vector<8x32xf32>, vector<8x32xf32> -> vector<40x32xf32>
      %42 = tpu.iota {dimensions = array<i32: 1>} : vector<1x32xi32>
      %c16_i32 = arith.constant 16 : i32
      %c0_i32_16 = arith.constant 0 : i32
      %43 = arith.cmpi eq, %c16_i32, %c0_i32_16 : i32
      %c1_i32 = arith.constant 1 : i32
      %44 = arith.select %43, %c1_i32, %c16_i32 : i32
      %45 = vector.broadcast %44 : i32 to vector<1x32xi32>
      %46 = arith.remsi %42, %45 : vector<1x32xi32>
      %c0_i32_17 = arith.constant 0 : i32
      %47 = vector.broadcast %c0_i32_17 : i32 to vector<1x32xi32>
      %48 = arith.cmpi ne, %46, %47 : vector<1x32xi32>
      %c0_i32_18 = arith.constant 0 : i32
      %49 = vector.broadcast %c0_i32_18 : i32 to vector<1x32xi32>
      %50 = arith.cmpi slt, %46, %49 : vector<1x32xi32>
      %c0_i32_19 = arith.constant 0 : i32
      %51 = arith.cmpi slt, %44, %c0_i32_19 : i32
      %52 = vector.broadcast %51 : i1 to vector<1x32xi1>
      %53 = vector.broadcast %52 : vector<1x32xi1> to vector<1x32xi1>
      %54 = arith.xori %50, %53 : vector<1x32xi1>
      %55 = arith.andi %54, %48 : vector<1x32xi1>
      %56 = vector.broadcast %44 : i32 to vector<1x32xi32>
      %57 = arith.addi %46, %56 : vector<1x32xi32>
      %58 = arith.select %55, %57, %46 : vector<1x32xi1>, vector<1x32xi32>
      %c1_i32_20 = arith.constant 1 : i32
      %59 = tpu.dynamic_rotate %41 by %c1_i32_20 dim 1 : vector<40x32xf32>, i32 -> vector<40x32xf32>
      %c-1_i32 = arith.constant -1 : i32
      %60 = vector.broadcast %c-1_i32 : i32 to vector<1x32xi32>
      %61 = arith.addi %58, %60 : vector<1x32xi32>
      %c0_i32_21 = arith.constant 0 : i32
      %62 = vector.broadcast %c0_i32_21 : i32 to vector<1x32xi32>
      %63 = arith.cmpi sge, %61, %62 : vector<1x32xi32>
      %c-1_i32_22 = arith.constant -1 : i32
      %64 = vector.broadcast %c-1_i32_22 : i32 to vector<1x32xi32>
      %65 = arith.addi %58, %64 : vector<1x32xi32>
      %c16_i32_23 = arith.constant 16 : i32
      %66 = vector.broadcast %c16_i32_23 : i32 to vector<1x32xi32>
      %67 = arith.cmpi slt, %65, %66 : vector<1x32xi32>
      %68 = arith.andi %63, %67 : vector<1x32xi1>
      %cst_24 = arith.constant 0.000000e+00 : f32
      %69 = vector.shape_cast %68 : vector<1x32xi1> to vector<1x32xi1>
      %70 = vector.broadcast %69 : vector<1x32xi1> to vector<40x32xi1>
      %71 = vector.broadcast %cst_24 : f32 to vector<40x32xf32>
      %72 = arith.select %70, %59, %71 : vector<40x32xi1>, vector<40x32xf32>
      %c31_i32 = arith.constant 31 : i32
      %73 = tpu.dynamic_rotate %41 by %c31_i32 dim 1 : vector<40x32xf32>, i32 -> vector<40x32xf32>
      %c1_i32_25 = arith.constant 1 : i32
      %74 = vector.broadcast %c1_i32_25 : i32 to vector<1x32xi32>
      %75 = arith.addi %58, %74 : vector<1x32xi32>
      %c0_i32_26 = arith.constant 0 : i32
      %76 = vector.broadcast %c0_i32_26 : i32 to vector<1x32xi32>
      %77 = arith.cmpi sge, %75, %76 : vector<1x32xi32>
      %c1_i32_27 = arith.constant 1 : i32
      %78 = vector.broadcast %c1_i32_27 : i32 to vector<1x32xi32>
      %79 = arith.addi %58, %78 : vector<1x32xi32>
      %c16_i32_28 = arith.constant 16 : i32
      %80 = vector.broadcast %c16_i32_28 : i32 to vector<1x32xi32>
      %81 = arith.cmpi slt, %79, %80 : vector<1x32xi32>
      %82 = arith.andi %77, %81 : vector<1x32xi1>
      %cst_29 = arith.constant 0.000000e+00 : f32
      %83 = vector.shape_cast %82 : vector<1x32xi1> to vector<1x32xi1>
      %84 = vector.broadcast %83 : vector<1x32xi1> to vector<40x32xi1>
      %85 = vector.broadcast %cst_29 : f32 to vector<40x32xf32>
      %86 = arith.select %84, %73, %85 : vector<40x32xi1>, vector<40x32xf32>
      %87 = tpu.concatenate %72, %41, %86 in 0 : vector<40x32xf32>, vector<40x32xf32>, vector<40x32xf32> -> vector<120x32xf32>
      %88 = arith.truncf %87 : vector<120x32xf32> to vector<120x32xbf16>
      %c0_30 = arith.constant 0 : index
      %c0_31 = arith.constant 0 : index
      %89 = vector.load %arg10[%c0_30, %c0_31] : memref<120x32xbf16, #tpu.memory_space<vmem>>, vector<120x32xbf16>
      tpu.vector_store %arg10[%c0_30, %c0_31], %88 {strides = array<i32>} : memref<120x32xbf16, #tpu.memory_space<vmem>>, vector<120x32xbf16>,
    } else {
    }
    %3 = arith.index_cast %arg1 : i32 to index
    %4 = memref.load %arg2[%3] : memref<4xi32, #tpu.memory_space<smem>>
    %c0_i32_1 = arith.constant 0 : i32
    %5 = arith.cmpi sgt, %4, %c0_i32_1 : i32
    %6 = arith.extui %5 : i1 to i32
    %c0_i32_2 = arith.constant 0 : i32
    %7 = arith.cmpi ne, %6, %c0_i32_2 : i32
    scf.if %7 {
      %c0 = arith.constant 0 : index
      %c0_3 = arith.constant 0 : index
      %c0_4 = arith.constant 0 : index
      %8 = vector.load %arg6[%c0, %c0_3, %c0_4] : memref<1x8x120xbf16, #tpu.memory_space<vmem>>, vector<1x8x120xbf16>
      %9 = vector.shape_cast %8 : vector<1x8x120xbf16> to vector<8x120xbf16>
      %c0_5 = arith.constant 0 : index
      %c0_6 = arith.constant 0 : index
      %10 = vector.load %arg10[%c0_5, %c0_6] : memref<120x32xbf16, #tpu.memory_space<vmem>>, vector<120x32xbf16>
      %cst = arith.constant dense<0.000000e+00> : vector<8x32xf32>
      %11 = tpu.matmul %9, %10, %cst {dimension_numbers = #tpu.dot_dimension_numbers<[1], [0], [0], [1], [0, 0, 1, 1], [], []>} : vector<8x120xbf16>, vector<120x32xbf16>, vector<8x32xf32> -> vector<8x32xf32>
      %c0_7 = arith.constant 0 : index
      %c0_8 = arith.constant 0 : index
      %12 = vector.load %arg7[%c0_7, %c0_8] : memref<32x2xf32, #tpu.memory_space<vmem>>, vector<32x2xf32>
      %c0_9 = arith.constant 0 : index
      %c0_10 = arith.constant 0 : index
      %13 = vector.load %arg8[%c0_9, %c0_10] : memref<2x32xf32, #tpu.memory_space<vmem>>, vector<2x32xf32>
      %cst_11 = arith.constant dense<0.000000e+00> : vector<8x2xf32>
      %14 = tpu.matmul %11, %12, %cst_11 {dimension_numbers = #tpu.dot_dimension_numbers<[1], [0], [0], [1], [0, 0, 1, 1], [], []>} : vector<8x32xf32>, vector<32x2xf32>, vector<8x2xf32> -> vector<8x2xf32>
      %cst_12 = arith.constant 6.250000e-02 : f32
      %15 = vector.broadcast %cst_12 : f32 to vector<8x2xf32>
      %16 = arith.mulf %14, %15 : vector<8x2xf32>
      %17 = arith.mulf %11, %11 : vector<8x32xf32>
      %cst_13 = arith.constant dense<0.000000e+00> : vector<8x2xf32>
      %18 = tpu.matmul %17, %12, %cst_13 {dimension_numbers = #tpu.dot_dimension_numbers<[1], [0], [0], [1], [0, 0, 1, 1], [], []>} : vector<8x32xf32>, vector<32x2xf32>, vector<8x2xf32> -> vector<8x2xf32>
      %cst_14 = arith.constant 6.250000e-02 : f32
      %19 = vector.broadcast %cst_14 : f32 to vector<8x2xf32>
      %20 = arith.mulf %18, %19 : vector<8x2xf32>
      %21 = arith.mulf %16, %16 : vector<8x2xf32>
      %22 = arith.subf %20, %21 : vector<8x2xf32>
      %cst_15 = arith.constant 9.99999974E-6 : f32
      %23 = vector.broadcast %cst_15 : f32 to vector<8x2xf32>
      %24 = arith.addf %22, %23 : vector<8x2xf32>
      %25 = math.rsqrt %24 : vector<8x2xf32>
      %cst_16 = arith.constant dense<0.000000e+00> : vector<8x32xf32>
      %26 = tpu.matmul %16, %13, %cst_16 {dimension_numbers = #tpu.dot_dimension_numbers<[1], [0], [0], [1], [0, 0, 1, 1], [], []>} : vector<8x2xf32>, vector<2x32xf32>, vector<8x32xf32> -> vector<8x32xf32>
      %cst_17 = arith.constant dense<0.000000e+00> : vector<8x32xf32>
      %27 = tpu.matmul %25, %13, %cst_17 {dimension_numbers = #tpu.dot_dimension_numbers<[1], [0], [0], [1], [0, 0, 1, 1], [], []>} : vector<8x2xf32>, vector<2x32xf32>, vector<8x32xf32> -> vector<8x32xf32>
      %28 = arith.subf %11, %26 : vector<8x32xf32>
      %29 = arith.mulf %28, %27 : vector<8x32xf32>
      %cst_18 = arith.constant 0.000000e+00 : f32
      %30 = vector.broadcast %cst_18 : f32 to vector<8x32xf32>
      %31 = arith.subf %30, %29 : vector<8x32xf32>
      %32 = math.exp %31 : vector<8x32xf32>
      %cst_19 = arith.constant 1.000000e+00 : f32
      %33 = vector.broadcast %cst_19 : f32 to vector<8x32xf32>
      %34 = arith.addf %33, %32 : vector<8x32xf32>
      %35 = tpu.reciprocal %34 {approx = true} : vector<8x32xf32> -> vector<8x32xf32>
      %36 = arith.mulf %29, %35 : vector<8x32xf32>
      %c0_20 = arith.constant 0 : index
      %c0_21 = arith.constant 0 : index
      %37 = vector.load %arg9[%c0_20, %c0_21] : memref<8x32xf32, #tpu.memory_space<vmem>>, vector<8x32xf32>
      %c0_22 = arith.constant 0 : index
      %c0_23 = arith.constant 0 : index
      %c0_24 = arith.constant 0 : index
      %38 = vector.load %arg4[%c0_22, %c0_23, %c0_24] : memref<1x1x32xf32, #tpu.memory_space<vmem>>, vector<1x1x32xf32>
      %39 = vector.shape_cast %38 : vector<1x1x32xf32> to vector<1x32xf32>
      %40 = vector.broadcast %39 : vector<1x32xf32> to vector<8x32xf32>
      %41 = arith.mulf %40, %36 : vector<8x32xf32>
      %42 = arith.addf %37, %41 : vector<8x32xf32>
      %c0_25 = arith.constant 0 : index
      %c0_26 = arith.constant 0 : index
      %43 = vector.load %arg9[%c0_25, %c0_26] : memref<8x32xf32, #tpu.memory_space<vmem>>, vector<8x32xf32>
      tpu.vector_store %arg9[%c0_25, %c0_26], %42 {strides = array<i32>} : memref<8x32xf32, #tpu.memory_space<vmem>>, vector<8x32xf32>,
    } else {
    }
    return
  }
  func.func @transform_0(%arg0: i32, %arg1: i32) -> i32 {
    %c0_i32 = arith.constant 0 : i32
    %c0_i32_0 = arith.constant 0 : i32
    return %c0_i32 : i32
  }
  func.func @transform_1(%arg0: i32, %arg1: i32) -> i32 {
    %c0_i32 = arith.constant 0 : i32
    %c0_i32_0 = arith.constant 0 : i32
    return %c0_i32 : i32
  }
  func.func @transform_2(%arg0: i32, %arg1: i32) -> (i32, i32, i32) {
    %c0_i32 = arith.constant 0 : i32
    %c0_i32_0 = arith.constant 0 : i32
    return %arg1, %c0_i32, %arg0 : i32, i32, i32
  }
  func.func @transform_3(%arg0: i32, %arg1: i32) -> (i32, i32) {
    %c0_i32 = arith.constant 0 : i32
    %c0_i32_0 = arith.constant 0 : i32
    return %c0_i32, %arg0 : i32, i32
  }
  func.func @transform_4(%arg0: i32, %arg1: i32) -> (i32, i32, i32) {
    %c0_i32 = arith.constant 0 : i32
    %c0_i32_0 = arith.constant 0 : i32
    %c0_i32_1 = arith.constant 0 : i32
    return %arg1, %c0_i32, %c0_i32_0 : i32, i32, i32
  }
  func.func @transform_5(%arg0: i32, %arg1: i32) -> (i32, i32) {
    %c0_i32 = arith.constant 0 : i32
    %c0_i32_0 = arith.constant 0 : i32
    %c0_i32_1 = arith.constant 0 : i32
    return %c0_i32, %c0_i32_0 : i32, i32
  }
  func.func @transform_6(%arg0: i32, %arg1: i32) -> (i32, i32) {
    %c0_i32 = arith.constant 0 : i32
    %c0_i32_0 = arith.constant 0 : i32
    %c0_i32_1 = arith.constant 0 : i32
    return %c0_i32, %c0_i32_0 : i32, i32
  }
  func.func @transform_7(%arg0: i32, %arg1: i32) -> (i32, i32) {
    %c0_i32 = arith.constant 0 : i32
    %c0_i32_0 = arith.constant 0 : i32
    return %c0_i32, %arg0 : i32, i32
  }
}

</mosaic_0001>

<bundles_post_ra>
// kernel: tpu_custom_call.1
= control target key start
LH: loop header
LB: loop body
LE: loop exit
PB: predicated region body
PF: predicated region fallthrough
CT: control target
= control target key end

     0   :  { %12 = vsyncpa [#allocation5], 0  ;;  %s1698_s0 = inlined_call_operand.vmem [shape: s32[4], index: 0, kind: input, shape index: {}]   ;;  %s1699_s1 = inlined_call_operand.vmem [shape: f32[2], index: 1, kind: input, shape index: {}]   ;;  %s1700_s2 = inlined_call_operand.vmem [shape: f32[4,1,32], index: 2, kind: input, shape index: {}]   ;;  %s1701_s3 = inlined_call_operand.vmem [shape: f32[8,32], index: 3, kind: input, shape index: {}]   ;;  %s1702_s4 = inlined_call_operand.vmem [shape: bf16[4,8,120], index: 4, kind: input, shape index: {}]   ;;  %s1703_s5 = inlined_call_operand.vmem [shape: f32[32,2], index: 5, kind: input, shape index: {}]   ;;  %s1704_s6 = inlined_call_operand.vmem [shape: f32[2,32], index: 6, kind: input, shape index: {}]   ;;  %s1705_s7 = inlined_call_operand.hbm [shape: f32[8,32], index: 7, kind: output, shape index: {}]  }
   0x1   :  { %13 = vsyncpa [#allocation7], 0 }
   0x2   :  { %14 = vsyncpa [#allocation4], 0  ;;  %s1505_s24 = smov 0   ;;  %s1507_s25 = smov 0  }
   0x3   :  { %s1509_s26 = smov 0  }
   0x4 LB: > { %s1107_s27 = sadd.s32 4294967295, %s1452_s26   ;;  %s29_s28 = sadd.s32 1, %s1448_s25  ;;  %s1452_s26 = sphi %s1509_s26, %s20_s26   ;;  %s1448_s25 = sphi %s1507_s25, %s1716_s25   ;;  %s1444_s24 = sphi %s1505_s24, %s1715_s24  }
   0x5   : > { %p30_p0 = scmp.ge.s32.totalorder %s29_s28, 4  ;;  %p1108_p1 = scmp.ge.s32.totalorder %s1452_s26, 1 }
   0x6   : > { %p227_p2 = scmp.lt.s32.totalorder %s1452_s26, 5  ;;  %p1532_p4 = scmp.eq.s32.totalorder %s1107_s27, 0 }
   0x7   : > { %s1718_s28 = smov (%p30_p0, %s29_s28), 0  ;;  %s240_s10 = sshll.u32 %s1698_s0, 4  ;;  %s241_s10 = int_to_ptr.vmem [resolvable:$true] %s240_s10 }
   0x8   : > { %p1526_p3 = pnand %p1108_p1, %p227_p2  ;;  %s251_s13 = sshll.u32 %s1699_s1, 4  ;;  %s252_s13 = int_to_ptr.vmem [resolvable:$true] %s251_s13 }
   0x9   : > { %s1710_s30 = scalar_select %p1532_p4, 1, 0 }
   0xa   : > { %s1709_s29 = scalar_select %p1526_p3, 1, 0 }
   0xb   : > { %p1258_p5 = pneg %p1526_p3  ;;  %s1364_s15 = scalar_lea.vmem %s241_s10, 16 }
   0xc   : > { %p1365_p7 = scmp.ne.s32.totalorder %s241_s10, %s1364_s15  ;;  %p1372_p11 = scmp.lt.s32.totalorder %s241_s10, %s241_s10 }
   0xd   : > { %p1546_p6 = pnand %p1532_p4, %p1258_p5  ;;  %p1373_p12 = scmp.lt.s32.totalorder %s1364_s15, %s1364_s15 }
   0xf   : > { %p1366_p8 = pneg %p1546_p6  ;;  %p1374_p13 = por %p1373_p12, %p1372_p11 }
  0x11   : > { %p1367_p9 = pnand %p1366_p8, %p1365_p7 }
  0x13   : > { %p1368_p10 = pneg %p1367_p9 }
  0x15   : > { %p1375_p0 = pnand %p1374_p13, %p1368_p10 }
  0x17   : > { %1378 = shalt.err (!%p1375_p0)
}
  0x18   : > { %s1454_s16 = smov [#allocation3]   ;;  %s1379_s17 = scalar_lea.vmem %s252_s13, 16 }
  0x19   : > { %1261 = dma.vmem_to_smem (!%p1546_p6), %s241_s10, 16, %s1454_s16, [#allocation5]  }
  0x1a   : > { %p1380_p1 = scmp.ne.s32.totalorder %s252_s13, %s1379_s17  ;;  %p1387_p4 = scmp.lt.s32.totalorder %s252_s13, %s252_s13 }
  0x1b   : > { %p1388_p3 = scmp.lt.s32.totalorder %s1379_s17, %s1379_s17 }
  0x1c   : > { %p1382_p2 = pnand %p1380_p1, %p1366_p8 }
  0x1d   : > { %p1389_p7 = por %p1388_p3, %p1387_p4 }
  0x1e   : > { %p1383_p5 = pneg %p1382_p2 }
  0x20   : > { %p1390_p9 = pnand %p1389_p7, %p1383_p5 }
  0x22   : > { %1393 = shalt.err (!%p1390_p9)
}
  0x23   : > { %s1455_s18 = smov [#allocation6]   ;;  %p1712_p10 = scmp.ne.s32.totalorder %s1709_s29, 0 }
  0x24   : > { %1264 = dma.vmem_to_smem (!%p1546_p6), %s252_s13, 16, %s1455_s18, [#allocation7]  }
  0x25   : > { %293 = sbr.rel (%p1712_p10) target bundleno = 1177 (0x499), region = 48  ;;  %p1713_p11 = scmp.ne.s32.totalorder (!%p1712_p10), %s1710_s30, 0 }
  0x2a   : > { %1431 = dma.done.wait (%p1713_p11), [#allocation5], 16  }
  0x2b   : > { %1433 = vsyncadd (%p1713_p11), [#allocation5], 4294967280 }
  0x2c   : > { %1435 = dma.done.wait (%p1713_p11), [#allocation7], 16  }
  0x2d   : > { %1437 = vsyncadd (%p1713_p11), [#allocation7], 4294967280 }
  0x2e   : > { %303 = sfence }
  0x2f   : > { %p334_p3 = scmp.lt.s32.totalorder %s1444_s24, 3  ;;  %p1117_p4 = scmp.ne.s32.totalorder %s1444_s24, 0 }
  0x30   : > { %s356_s11 = sld [smem:[#allocation6]] (!%p1117_p4)  ;;  %s1457_s13 = smov (!%p1117_p4), 32  }
  0x31   : > { %s1568_s19 = scalar_select %p334_p3, %s1444_s24, 3 }
  0x32   : > { %352 = sbr.rel (%p1117_p4) target bundleno = 465 (0x1d1), region = 60  ;;  %s1118_s12 = sld [smem:[#allocation6 + $0x1]] (!%p1117_p4) }
  0x33   : > { %s339_s22 = scalar_lea.vmem %s1700_s2, %s1568_s19  ;;  %s1116_s23 = sshll.u32 %s1568_s19, 2 }
  0x34   : > { %s1578_s9 = scalar_lea.vmem %s1702_s4, %s1116_s23  ;;  %s1459_s14 = smov (!%p1117_p4), 97  }
  0x35   : > { %s1461_s15 = smov (!%p1117_p4), 127  }
  0x37   : > { %v355_v0 = vld [vmem:[%s1701_s3] sm:$0xff]  ;;  %vm540_vm0 = vcmask 257024   ;;  %v1456_v2 = vmov 1.0|1.0   ;;  %v364_v4 = vstv %s356_s11  ;;  %v1458_v24 = vmov 1.0  }
  0x38   : > { %v358_v1 = vsub.f32 0.0, %v355_v0  ;;  %547 = vst.msk [vmem:[#allocation2 + $0x18] sm:$0xf] %vm540_vm0, %v1456_v2  ;;  %v365_v5 = vmul.f32 %v364_v4, %v355_v0  ;;  %v366_v6 = vstv %s1118_s12  ;;  %vm391_vm1 = vcmask 1047808  }
  0x39   : > { %vm353_vm2 = vcmask 261120   ;;  %v1460_v56 = vmov 0.0   ;;  %v377_v57 = vlaneseq }
  0x3a   : > { %v359_v3 = vmul.f32 1.442695, %v358_v1  ;;  %v367_v7 = vadd.f32 %v366_v6, %v365_v5  ;;  %354 = vst.msk [vmem:[#allocation8] sm:$0xff] %vm353_vm2, %v1460_v56 }
  0x3b   : > { %v378_v58 = vand.u32 127, %v377_v57 }
  0x3c   : > { %1346 = vpow2.f32 %v359_v3  ;;  %v1163_v8 = vpack.c.bf16 %v367_v7, %v367_v7  ;;  %v368_v9 = vmul.f32 3.0, %v367_v7  ;;  %v372_v12 = vmul.f32 5.0, %v367_v7 }
  0x3d   : > { %v374_v14 = vmul.f32 2.0, %v367_v7  ;;  %v383_v59 = vand.u32 15, %v378_v58 }
  0x3e   : > { %548 = vst.msk [vmem:[#allocation2 + $0x1c] sm:$0xf] %vm540_vm0, %v1163_v8  ;;  %v369_v10 = vmul.f32 %v368_v9, %v367_v7 }
  0x3f   : > { %v422_v60 = vadd.s32 4294967295, %v383_v59 }
  0x40   : > { %v1119_v11 = vadd.f32 -1.0, %v369_v10 }
  0x41   : > { %vm423_vm3 = vcmp.ge.s32.totalorder %v422_v60, 0 }
  0x42   : > { %v371_v13 = vmul.f32 0.5, %v1119_v11 }
  0x44   : > { %v1164_v17 = vpack.c.bf16 %v371_v13, %v371_v13  ;;  %v373_v18 = vmul.f32 %v372_v12, %v371_v13  ;;  %v1311_v27 = vpack.i.bf16 %v371_v13, %v367_v7 }
  0x46   : > { %549 = vst.msk [vmem:[#allocation2 + $0x20] sm:$0xf] %vm540_vm0, %v1164_v17  ;;  %v375_v19 = vsub.f32 %v373_v18, %v374_v14 }
  0x48   : > { %v376_v20 = vmul.f32 0.33333334, %v375_v19 }
  0x49   : > { %v1347_v15 = vpop.eup %1346 }
  0x4a   : > { %v361_v16 = vadd.f32 1.0, %v1347_v15  ;;  %404 = vrot.lane.b32.xlu1 %v376_v20, %s1457_s13  ;;  %v1165_v21 = vpack.c.bf16 %v376_v20, %v376_v20 }
  0x4c   : > { %1348 = vrcp.f32 %v361_v16  ;;  %550 = vst.msk [vmem:[#allocation2 + $0x24] sm:$0xf] %vm540_vm0, %v1165_v21 }
  0x59   : > { %v1349_v22 = vpop.eup %1348 }
  0x5a   : > { %v363_v23 = vmul.f32 %v1349_v22, %v355_v0  ;;  %v453_v0 = vadd.s32 1, %v383_v59 }
  0x5c   : > { %v1306_v25 = vpack.i.bf16 %v1458_v24, %v363_v23  ;;  %v1161_v26 = vpack.c.bf16 %v363_v23, %v363_v23  ;;  %vm455_vm4 = vcmp.lt.s32.totalorder %v453_v0, 16 }
  0x5e   : > { %1307 = vrot.lane.b32.xlu0 %v1306_v25, %s1457_s13  ;;  %546 = vst.msk [vmem:[#allocation2 + $0x14] sm:$0xf] %vm540_vm0, %v1161_v26 }
  0x62   : > { %1312 = vrot.lane.b32.xlu0 %v1311_v27, %s1457_s13 }
  0xbc   : > { %v405_v35 = vpop.permute.xlu1 %404 }
  0xbd   : > { %v406_v40 = vsel %vm391_vm1, %v405_v35, %v376_v20 }
  0xd0   : > { %v1308_v28 = vpop.permute.xlu0 %1307 }
  0xd1   : > { %v1310_v29 = vunpack.i.h.bf16 %v1308_v28  ;;  %v1309_v30 = vunpack.i.l.bf16 %v1308_v28 }
  0xd3   : > { %v397_v31 = vsel %vm391_vm1, %v1310_v29, 1.0  ;;  %v394_v32 = vsel %vm391_vm1, %v1309_v30, %v363_v23 }
  0xd4   : > { %v1313_v33 = vpop.permute.xlu0 %1312  ;;  %v1321_v34 = vpack.i.bf16 %v397_v31, %v394_v32 }
  0xd5   : > { %v1315_v36 = vunpack.i.h.bf16 %v1313_v33  ;;  %v1314_v37 = vunpack.i.l.bf16 %v1313_v33 }
  0xd6   : > { %1322 = vrot.lane.b32.xlu1 %v1321_v34, %s1457_s13 }
  0xd7   : > { %v400_v38 = vsel %vm391_vm1, %v1314_v37, %v367_v7  ;;  %v403_v39 = vsel %vm391_vm1, %v1315_v36, %v371_v13 }
  0xd8   : > { %v1316_v41 = vpack.i.bf16 %v403_v39, %v400_v38 }
  0xda   : > { %1317 = vrot.lane.b32.xlu0 %v1316_v41, %s1457_s13  ;;  %415 = vrot.lane.b32.xlu1 %v406_v40, %s1457_s13 }
 0x148   : > { %v1323_v42 = vpop.permute.xlu1 %1322 }
 0x149   : > { %v1325_v43 = vunpack.i.h.bf16 %v1323_v42  ;;  %v1324_v44 = vunpack.i.l.bf16 %v1323_v42 }
 0x14b   : > { %v418_v45 = vsel %vm391_vm1, %v1325_v43, 1.0  ;;  %v417_v51 = vsel %vm391_vm1, %v1324_v44, %v363_v23 }
 0x14c   : > { %v1318_v46 = vpop.permute.xlu0 %1317  ;;  %v416_v47 = vpop.permute.xlu1 %415  ;;  %v1331_v55 = vpack.i.bf16 %v418_v45, %v417_v51 }
 0x14d   : > { %v1320_v48 = vunpack.i.h.bf16 %v1318_v46  ;;  %v1319_v49 = vunpack.i.l.bf16 %v1318_v46  ;;  %v421_v50 = vsel %vm391_vm1, %v416_v47, %v376_v20 }
 0x14e   : > { %441 = vrot.lane.b32.xlu0 %v421_v50, %s1459_s14 }
 0x14f   : > { %v419_v52 = vsel %vm391_vm1, %v1319_v49, %v367_v7  ;;  %v420_v53 = vsel %vm391_vm1, %v1320_v48, %v371_v13 }
 0x150   : > { %v1326_v54 = vpack.i.bf16 %v420_v53, %v419_v52 }
 0x152   : > { %1327 = vrot.lane.b32.xlu1 %v1326_v54, %s1459_s14  ;;  %1332 = vrot.lane.b32.xlu0 %v1331_v55, %s1459_s14 }
 0x156   : > { %1337 = vrot.lane.b32.xlu1 %v1331_v55, %s1461_s15  ;;  %1342 = vrot.lane.b32.xlu0 %v1326_v54, %s1461_s15 }
 0x15a   : > { %467 = vrot.lane.b32.xlu1 %v421_v50, %s1461_s15 }
 0x1c0   : > { %v442_v61 = vpop.permute.xlu0 %441 }
 0x1c1   : > { %v452_v62 = vsel %vm423_vm3, %v442_v61, 0.0 }
 0x1c2   : > { %v1160_v63 = vpack.c.bf16 %v452_v62, %v452_v62 }
 0x1c4   : > { %545 = vst.msk [vmem:[#allocation2 + $0x10] sm:$0xf] %vm540_vm0, %v1160_v63  ;;  %v1328_v1 = vpop.permute.xlu1 %1327  ;;  %v1333_v2 = vpop.permute.xlu0 %1332 }
 0x1c5   : > { %v1330_v3 = vunpack.i.h.bf16 %v1328_v1  ;;  %v1329_v4 = vunpack.i.l.bf16 %v1328_v1  ;;  %v1335_v5 = vunpack.i.h.bf16 %v1333_v2  ;;  %v1334_v6 = vunpack.i.l.bf16 %v1333_v2 }
 0x1c7   : > { %v451_v7 = vsel %vm423_vm3, %v1330_v3, 0.0  ;;  %v450_v8 = vsel %vm423_vm3, %v1329_v4, 0.0  ;;  %v449_v9 = vsel %vm423_vm3, %v1335_v5, 0.0  ;;  %v448_v10 = vsel %vm423_vm3, %v1334_v6, 0.0 }
 0x1c8   : > { %v1159_v11 = vpack.c.bf16 %v451_v7, %v451_v7  ;;  %v1158_v12 = vpack.c.bf16 %v450_v8, %v450_v8  ;;  %v1157_v13 = vpack.c.bf16 %v449_v9, %v449_v9  ;;  %v1156_v14 = vpack.c.bf16 %v448_v10, %v448_v10  ;;  %v1338_v15 = vpop.permute.xlu1 %1337  ;;  %v1343_v16 = vpop.permute.xlu0 %1342 }
 0x1c9   : > { %v1340_v17 = vunpack.i.h.bf16 %v1338_v15  ;;  %v1339_v18 = vunpack.i.l.bf16 %v1338_v15  ;;  %v1345_v19 = vunpack.i.h.bf16 %v1343_v16  ;;  %v1344_v20 = vunpack.i.l.bf16 %v1343_v16 }
 0x1ca   : > { %544 = vst.msk [vmem:[#allocation2 + $0xc] sm:$0xf] %vm540_vm0, %v1159_v11  ;;  %543 = vst.msk [vmem:[#allocation2 + $0x8] sm:$0xf] %vm540_vm0, %v1158_v12 }
 0x1cb   : > { %542 = vst.msk [vmem:[#allocation2 + $0x4] sm:$0xf] %vm540_vm0, %v1157_v13  ;;  %541 = vst.msk [vmem:[#allocation2] sm:$0xf] %vm540_vm0, %v1156_v14  ;;  %v475_v21 = vsel %vm455_vm4, %v1340_v17, 0.0  ;;  %v474_v22 = vsel %vm455_vm4, %v1339_v18, 0.0 }
 0x1cc   : > { %v477_v23 = vsel %vm455_vm4, %v1345_v19, 0.0  ;;  %v476_v24 = vsel %vm455_vm4, %v1344_v20, 0.0  ;;  %v1167_v25 = vpack.c.bf16 %v475_v21, %v475_v21  ;;  %v1166_v26 = vpack.c.bf16 %v474_v22, %v474_v22  ;;  %v468_v29 = vpop.permute.xlu1 %467 }
 0x1cd   : > { %v1169_v27 = vpack.c.bf16 %v477_v23, %v477_v23  ;;  %v1168_v28 = vpack.c.bf16 %v476_v24, %v476_v24  ;;  %v478_v30 = vsel %vm455_vm4, %v468_v29, 0.0 }
 0x1ce   : > { %552 = vst.msk [vmem:[#allocation2 + $0x2c] sm:$0xf] %vm540_vm0, %v1167_v25  ;;  %551 = vst.msk [vmem:[#allocation2 + $0x28] sm:$0xf] %vm540_vm0, %v1166_v26  ;;  %v1170_v31 = vpack.c.bf16 %v478_v30, %v478_v30 }
 0x1cf   : > { %554 = vst.msk [vmem:[#allocation2 + $0x34] sm:$0xf] %vm540_vm0, %v1169_v27  ;;  %553 = vst.msk [vmem:[#allocation2 + $0x30] sm:$0xf] %vm540_vm0, %v1168_v28 }
 0x1d0   : > { %555 = vst.msk [vmem:[#allocation2 + $0x38] sm:$0xf] %vm540_vm0, %v1170_v31 }
 0x1d1 PF: > { %s556_s16 = sld [smem:[#allocation3 + %s1444_s24]] }
 0x1d7   : > { %p1135_p6 = scmp.le.s32.totalorder %s556_s16, 0 }
 0x1d9   : > { %560 = sbr.rel (%p1135_p6) target bundleno = 1162 (0x48a), region = 64 }
 0x1de   : > { %v1350_v32 = vld [vmem:[#allocation2 + $0x38] ss:$0 sps:$4 sm:$0xff]   ;;  %vm626_vm5 = vcmask 1043456   ;;  %v1462_v33 = vmov 0.0   ;;  %vm1463_vm6 = vmmov 0   ;;  %v1351_v35 = vld [vmem:[#allocation2 + $0x30] sm:$0xff]  }
 0x1df   : > { %1194 = vmatprep.subr.bf16.mxu0 %v1462_v33  ;;  %1214 = vmatprep.subr.mxu1 %v1462_v33  ;;  %v628_v34 = vsel %vm626_vm5, %v1350_v32, 0  ;;  %v1352_v36 = vld [vmem:[#allocation2 + $0x28] sm:$0xff]   ;;  %v673_v37 = vld [vmem:[%s1703_s5 + $0x18] sm:$0xff]  ;;  %v672_v38 = vld [vmem:[%s1703_s5 + $0x10] sm:$0xff]  ;;  %vm622_vm7 = vcmask 982016   ;;  %vm675_vm8 = vcmask 261120  }
 0x1e0   : > { %1210 = vmatprep.mubr.msk.bf16.mxu0 %vm1463_vm6, %v1462_v33  ;;  %1222 = vmatprep.mubr.msk.f32.mxu1 %vm1463_vm6, %v1462_v33  ;;  %v671_v39 = vld [vmem:[%s1703_s5 + $0x8] sm:$0xff]  ;;  %v1353_v40 = vld [vmem:[#allocation2 + $0x20] sm:$0xff]   ;;  %v1354_v42 = vld [vmem:[#allocation2 + $0x18] sm:$0xff]   ;;  %vm833_vm9 = vcmask 1041408   ;;  %vm829_vm10 = vcmask 15360  }
 0x1e1   : > { %1195 = vmatpush3.bf16.msra.mxu0 %v628_v34  ;;  %1215 = vmatpush3.msra.mxu1 %v673_v37  ;;  %v670_v41 = vld [vmem:[%s1703_s5] sm:$0xff]  ;;  %v1355_v43 = vld [vmem:[#allocation2 + $0x10] sm:$0xff]   ;;  %v1356_v44 = vld [vmem:[#allocation2 + $0x8] sm:$0xff]  }
 0x1e2   : > { %1196 = vmatprep.subr.bf16.mxu0 %v1462_v33  ;;  %1216 = vmatprep.subr.mxu1 %v1462_v33  ;;  %v1357_v45 = vld [vmem:[#allocation2] sm:$0xff]  }
 0x1e3   : > { %1217 = vmatpush3.msra.mxu1 %v672_v38  ;;  %v561_v46 = vld [vmem:[%s1578_s9] sm:$0xf] }
 0x1e4   : > { %1218 = vmatprep.subr.mxu1 %v1462_v33  ;;  %v674_v52 = vld [vmem:[%s1704_s6] sm:$0x3] }
 0x1e5   : > { %1197 = vmatpush3.bf16.msra.mxu0 %v1351_v35  ;;  %1219 = vmatpush3.msra.mxu1 %v671_v39  ;;  %v1151_v10 = vld [vmem:[%s339_s22] ss:$0 sm:$0xff] }
 0x1e6   : > { %1198 = vmatprep.subr.bf16.mxu0 %v1462_v33  ;;  %1220 = vmatprep.subr.mxu1 %v1462_v33  ;;  %v988_v12 = vld [vmem:[#allocation8] sm:$0xff] }
 0x1e7   : > { %1221 = vmatpush3.msra.mxu1 %v670_v41 }
 0x1e8   : > { %1225 = vmatprep.subr.mxu1 %v1462_v33 }
 0x1e9   : > { %1199 = vmatpush3.bf16.msra.mxu0 %v1352_v36 }
 0x1ea   : > { %1200 = vmatprep.subr.bf16.mxu0 %v1462_v33 }
 0x1ed   : > { %1201 = vmatpush3.bf16.msra.mxu0 %v1353_v40 }
 0x1ee   : > { %1202 = vmatprep.subr.bf16.mxu0 %v1462_v33 }
 0x1f1   : > { %1203 = vmatpush3.bf16.msra.mxu0 %v1354_v42 }
 0x1f2   : > { %1204 = vmatprep.subr.bf16.mxu0 %v1462_v33 }
 0x1f5   : > { %1205 = vmatpush3.bf16.msra.mxu0 %v1355_v43 }
 0x1f6   : > { %1206 = vmatprep.subr.bf16.mxu0 %v1462_v33 }
 0x1f9   : > { %1207 = vmatpush3.bf16.msra.mxu0 %v1356_v44 }
 0x1fa   : > { %1208 = vmatprep.subr.bf16.mxu0 %v1462_v33 }
 0x1fd   : > { %1209 = vmatpush3.bf16.msra.mxu0 %v1357_v45 }
 0x200   : > { %1211 = vmatmul.mubr.msk.bf16.vlgmr.msra.gmra.mxu0 %vm622_vm7, %v561_v46 }
 0x2c0   : > { %v664_v47 = vpop.f32.mrf.mxu0 }
 0x2c1   : > { %1223 = vmatmul.mubr.msk.f32.vlgmr.msra.gmra.mxu1 %vm675_vm8, %v664_v47  ;;  %v750_v51 = vmul.f32 %v664_v47, %v664_v47 }
 0x2c2   : > { %1226 = vmatpush3.msra.mxu1 %v673_v37  ;;  %v1212_v48 = vpop.f32.mrf.mxu0  ;;  %1233 = vmatprep.mubr.msk.f32.mxu1 %vm1463_vm6, %v1462_v33 }
 0x2c3   : > { %1227 = vmatprep.subr.mxu1 %v1462_v33 }
 0x2c4   : > { %1228 = vmatpush3.msra.mxu1 %v672_v38  ;;  %v667_v49 = vpop.f32.mrf.mxu0 }
 0x2c5   : > { %1229 = vmatprep.subr.mxu1 %v1462_v33 }
 0x2c6   : > { %1230 = vmatpush3.msra.mxu1 %v671_v39  ;;  %v1213_v50 = vpop.f32.mrf.mxu0 }
 0x2c7   : > { %1231 = vmatprep.subr.mxu1 %v1462_v33 }
 0x2c8   : > { %1232 = vmatpush3.msra.mxu1 %v670_v41 }
 0x2c9   : > { %1234 = vmatmul.mubr.msk.f32.vlgmr.msra.gmra.mxu1 %vm675_vm8, %v750_v51  ;;  %1236 = vmatprep.subr.mxu1 %v1462_v33 }
 0x2ca   : > { %1238 = vmatprep.mubr.msk.f32.mxu1 %vm1463_vm6, %v1462_v33  ;;  %1237 = vmatpush3.msk.msra.mxu1 %vm833_vm9, %v674_v52 }
 0x2cb   : > { %1241 = vmatprep.subr.mxu1 %v1462_v33 }
 0x381   : > { %v745_v53 = vpop.f32.mrf.mxu1 }
 0x382   : > { %v749_v54 = vmul.f32 0.0625, %v745_v53 }
 0x383   : > { %v1224_v55 = vpop.f32.mrf.mxu1 }
 0x384   : > { %1239 = vmatmul.mubr.msk.f32.vlgmr.msra.gmra.mxu1 %vm829_vm10, %v749_v54  ;;  %v825_v57 = vmul.f32 %v749_v54, %v749_v54 }
 0x385   : > { %1242 = vmatpush3.msk.msra.mxu1 %vm833_vm9, %v674_v52  ;;  %1243 = vmatprep.mubr.msk.f32.mxu1 %vm1463_vm6, %v1462_v33 }
 0x389   : > { %v820_v56 = vpop.f32.mrf.mxu1 }
 0x38a   : > { %v824_v58 = vmul.f32 0.0625, %v820_v56 }
 0x38b   : > { %v1235_v59 = vpop.f32.mrf.mxu1 }
 0x38c   : > { %v826_v60 = vsub.f32 %v824_v58, %v825_v57 }
 0x38e   : > { %v827_v61 = vadd.f32 1e-05, %v826_v60 }
 0x390   : > { %1358 = vrsqrt.f32 %v827_v61 }
 0x39d   : > { %v1359_v62 = vpop.eup %1358 }
 0x39e   : > { %1244 = vmatmul.mubr.msk.f32.vlgmr.msra.gmra.mxu1 %vm829_vm10, %v1359_v62 }
 0x444   : > { %v903_v63 = vpop.f32.mrf.mxu1 }
 0x445   : > { %v980_v1 = vsub.f32 %v664_v47, %v903_v63 }
 0x446   : > { %v1240_v0 = vpop.f32.mrf.mxu1 }
 0x45e   : > { %v976_v2 = vpop.f32.mrf.mxu1 }
 0x45f   : > { %v981_v3 = vmul.f32 %v980_v1, %v976_v2 }
 0x460   : > { %v1245_v4 = vpop.f32.mrf.mxu1 }
 0x461   : > { %v982_v5 = vsub.f32 0.0, %v981_v3 }
 0x463   : > { %v983_v6 = vmul.f32 1.442695, %v982_v5 }
 0x465   : > { %1360 = vpow2.f32 %v983_v6 }
 0x472   : > { %v1361_v7 = vpop.eup %1360 }
 0x473   : > { %v985_v8 = vadd.f32 1.0, %v1361_v7 }
 0x475   : > { %1362 = vrcp.f32 %v985_v8 }
 0x482   : > { %v1363_v9 = vpop.eup %1362 }
 0x483   : > { %v987_v11 = vmul.f32 %v1363_v9, %v981_v3 }
 0x485   : > { %v996_v13 = vmul.f32 %v1151_v10, %v987_v11 }
 0x487   : > { %v997_v14 = vadd.f32 %v996_v13, %v988_v12 }
 0x489   : > { %998 = vst.msk [vmem:[#allocation8] sm:$0xff] %vm675_vm8, %v997_v14 }
 0x48a PF: > { %p1674_p8 = scmp.eq.s32.totalorder %s1107_s27, 3  ;;  %s1464_s13 = smov [#allocation8]  }
 0x48b   : > { %s1008_s14 = sshll.u32 %s1464_s13, 4  ;;  %s1009_s14 = int_to_ptr.vmem [resolvable:$true] %s1008_s14 }
 0x48c   : > { %s1394_s15 = scalar_lea.vmem %s1009_s14, 128  ;;  %p1401_p1 = scmp.lt.s32.totalorder %s1009_s14, %s1009_s14 }
 0x48d   : > { %p1395_p12 = scmp.ne.s32.totalorder %s1009_s14, %s1394_s15  ;;  %p1402_p2 = scmp.lt.s32.totalorder %s1394_s15, %s1394_s15 }
 0x48f   : > { %p1396_p13 = pnand %p1395_p12, %p1674_p8  ;;  %p1403_p5 = por %p1402_p2, %p1401_p1 }
 0x491   : > { %p1397_p0 = pneg %p1396_p13 }
 0x493   : > { %p1404_p7 = pnand %p1403_p5, %p1397_p0 }
 0x495   : > { %1407 = shalt.err (!%p1404_p7)
}
 0x496   : > { %1255 = dma.vmem_to_hbm [thread:$0]  (%p1674_p8), %s1009_s14, 128, %s1705_s7, [#allocation4]  }
 0x497   : > { %1439 = dma.done.wait (%p1674_p8), [#allocation4], 128  }
 0x498   : > { %1441 = vsyncadd (%p1674_p8), [#allocation4], 4294967168 }
 0x499 PF: > { %s20_s26 = sadd.s32 1, %s1452_s26   ;;  %s1715_s24 = smov %s1448_s25 }
 0x49a   : > { %p17_p9 = scmp.ge.s32.totalorder %s20_s26, 6   ;;  %s1716_s25 = smov %s1718_s28 }
 0x49c   :  { %19 = sbr.rel (!%p17_p9) target bundleno = 4 (0x4), region = 99 }
 0x4a1   :  { %1021 = vsyncpa [#allocation4], 1 }
 0x4a2   :  { %1023 = vsyncpa [#allocation4 + $0x1], 1 }
 0x4a3   :  { %1024 = vsyncpa [#allocation5], 1 }
 0x4a4   :  { %1026 = vsyncpa [#allocation5 + $0x1], 1 }
 0x4a5   :  { %1027 = vsyncpa [#allocation7], 1 }

</bundles_post_ra>
